<compile_context>
chip_gen: v7x
topology: tpu7x:2x2x1
jax: 0.10.0
libtpu: 0.0.40
codegen_flags: <defaults>
</compile_context>

<pallas_src>
import numpy as np
import jax
import jax.numpy as jnp
from jax.experimental import pallas as pl
from jax.experimental.pallas import tpu as pltpu

# ----------------------------- config ---------------------------------------
B = 2          # batch
T = 18         # input sequence length
IN_DIM = 32    # in_dim
HIDDEN = 32    # hidden_size (small for the example; 256 in the real module)
KSIZE = 5      # kernel_size
STRIDE = 3
PAD = (KSIZE - 1) // 2
N_LAYERS = 2
EPS = 1e-5     # nn.LayerNorm default


def _conv_out_len(t_in):
    return (t_in + 2 * PAD - KSIZE) // STRIDE + 1


T1 = _conv_out_len(T)    # time length after layer 1
T2 = _conv_out_len(T1)   # time length after layer 2


# ----------------------------- kernel ---------------------------------------
def utterance_encoder_kernel(x_ref, sel1_ref, w1_ref, sel2_ref, w2_ref,
                             avg_ref, vecs_ref, o_ref):
    vecs = vecs_ref[...]                                   # (6, HIDDEN) f32

    def conv_relu_ln(x, sel_ref, w_ref, bias, gamma, beta):
        # x: (R_in, Cin); sel_ref: (K, R_out, R_in); w_ref: (K, Cin, Cout)
        # Strided conv == sum over taps of (selection matmul) @ (weight matmul).
        acc = jnp.dot(jnp.dot(sel_ref[0], x, preferred_element_type=jnp.float32),
                      w_ref[0], preferred_element_type=jnp.float32)
        for k in range(1, KSIZE):
            acc = acc + jnp.dot(
                jnp.dot(sel_ref[k], x, preferred_element_type=jnp.float32),
                w_ref[k], preferred_element_type=jnp.float32)
        acc = acc + bias                                   # conv bias
        acc = jnp.maximum(acc, 0.0)                        # ReLU
        mean = jnp.mean(acc, axis=-1, keepdims=True)       # LayerNorm (channel)
        var = jnp.mean((acc - mean) ** 2, axis=-1, keepdims=True)
        # Dropout(p=0.5) -> identity at inference time.
        return (acc - mean) * jax.lax.rsqrt(var + EPS) * gamma + beta

    x = x_ref[...].astype(jnp.float32)                     # (B*T, IN_DIM)
    h1 = conv_relu_ln(x, sel1_ref, w1_ref, vecs[0:1], vecs[1:2], vecs[2:3])
    h2 = conv_relu_ln(h1, sel2_ref, w2_ref, vecs[3:4], vecs[4:5], vecs[5:6])
    # transpose + avg_pool1d over the full time axis == per-batch mean over
    # time, done as one matmul with the (B, B*T2) averaging matrix.
    o_ref[...] = jnp.dot(avg_ref[...], h2,
                         preferred_element_type=jnp.float32).astype(o_ref.dtype)


# ----------------------------- wrapper ---------------------------------------
def _build_sel(t_in, t_out, batch):
    """Block-diagonal im2col selection matrices, one per conv tap.

    sel[k, b*t_out + j, b*t_in + t] = 1  iff  t == STRIDE*j + k - PAD (in range)
    (out-of-range taps simply select nothing == zero padding).
    """
    sel = np.zeros((KSIZE, batch * t_out, batch * t_in), np.float32)
    for k in range(KSIZE):
        for b in range(batch):
            for j in range(t_out):
                t = STRIDE * j + k - PAD
                if 0 <= t < t_in:
                    sel[k, b * t_out + j, b * t_in + t] = 1.0
    return jnp.asarray(sel)


def _build_avg(t_out, batch):
    avg = np.zeros((batch, batch * t_out), np.float32)
    for b in range(batch):
        avg[b, b * t_out:(b + 1) * t_out] = 1.0 / t_out
    return jnp.asarray(avg)


def utterance_encoder(x, params):
    """x: (B, T, IN_DIM) float32 -> (B, HIDDEN, 1) float32."""
    (w1, b1, g1, be1), (w2, b2, g2, be2) = params["layers"]
    # Pack all tiny per-channel vectors into one array -> one DMA.
    vecs = jnp.stack([b1, g1, be1, b2, g2, be2])           # (6, HIDDEN)

    x2d = x.reshape(B * T, IN_DIM)                         # layout plumbing only
    sel1 = _build_sel(T, T1, B)                            # (K, B*T1, B*T)
    sel2 = _build_sel(T1, T2, B)                           # (K, B*T2, B*T1)
    avg = _build_avg(T2, B)                                # (B, B*T2)

    def full(a):
        return pl.BlockSpec(a.shape, lambda i: (0,) * a.ndim)

    out = pl.pallas_call(
        utterance_encoder_kernel,
        out_shape=jax.ShapeDtypeStruct((B, HIDDEN), jnp.float32),
        grid_spec=pltpu.PrefetchScalarGridSpec(
            num_scalar_prefetch=0,
            grid=(1,),                                     # whole batch, 1 step
            in_specs=[full(x2d), full(sel1), full(w1),
                      full(sel2), full(w2), full(avg), full(vecs)],
            out_specs=pl.BlockSpec((B, HIDDEN), lambda i: (0, 0)),
        ),
        compiler_params=pltpu.CompilerParams(
            dimension_semantics=("arbitrary",)),
    )(x2d, sel1, w1, sel2, w2, avg, vecs)
    return out[:, :, None]                                 # (B, HIDDEN, 1)


# ----------------------------- reference (plain JAX) --------------------------
def reference_forward(x, params):
    h = x                                                  # (B, T, C)
    for (w, b, g, beta) in params["layers"]:
        t_in = h.shape[1]
        t_out = _conv_out_len(t_in)
        hp = jnp.pad(h, ((0, 0), (PAD, PAD), (0, 0)))
        acc = sum(
            jnp.einsum("btc,cd->btd",
                       hp[:, k:k + STRIDE * (t_out - 1) + 1:STRIDE, :],
                       w[k])
            for k in range(KSIZE)) + b
        acc = jnp.maximum(acc, 0.0)
        mean = acc.mean(-1, keepdims=True)
        var = ((acc - mean) ** 2).mean(-1, keepdims=True)
        h = (acc - mean) / jnp.sqrt(var + EPS) * g + beta
    # x.transpose(1,2); F.avg_pool1d(x, x.size(2))  ==  mean over time
    return h.mean(axis=1)[:, :, None]                      # (B, HIDDEN, 1)


# ----------------------------- params / main ---------------------------------
def init_params(key):
    ks = jax.random.split(key, 8)

    def conv_layer(k_w, k_b, k_g, k_be, cin, cout):
        # PyTorch Conv1d weight is (Cout, Cin, K); stored here as (K, Cin, Cout).
        w = 0.1 * jax.random.normal(k_w, (KSIZE, cin, cout), jnp.float32)
        b = 0.1 * jax.random.normal(k_b, (cout,), jnp.float32)
        gamma = 1.0 + 0.1 * jax.random.normal(k_g, (cout,), jnp.float32)
        beta = 0.1 * jax.random.normal(k_be, (cout,), jnp.float32)
        return (w, b, gamma, beta)

    layers = (
        conv_layer(ks[0], ks[1], ks[2], ks[3], IN_DIM, HIDDEN),
        conv_layer(ks[4], ks[5], ks[6], ks[7], HIDDEN, HIDDEN),
    )
    return {"layers": layers}


if __name__ == "__main__":
    key = jax.random.PRNGKey(0)
    kx, kp = jax.random.split(key)
    x = jax.random.normal(kx, (B, T, IN_DIM), jnp.float32)
    params = init_params(kp)

    out = utterance_encoder(x, params)
    out = jax.block_until_ready(out)

    ref = reference_forward(x, params)
    assert out.shape == (B, HIDDEN, 1), out.shape
    max_err = float(jnp.max(jnp.abs(out - ref)))
    assert jnp.allclose(out, ref, rtol=5e-3, atol=5e-3), max_err
    print("KERNEL_OK")
</pallas_src>

<mosaic_0001>
module attributes {stable_mosaic.version = 11 : i64} {
  func.func @utterance_encoder_kernel(%arg0: i32, %arg1: memref<36x32xf32, #tpu.memory_space<vmem>>, %arg2: memref<5x12x36xf32, #tpu.memory_space<vmem>>, %arg3: memref<5x32x32xf32, #tpu.memory_space<vmem>>, %arg4: memref<5x4x12xf32, #tpu.memory_space<vmem>>, %arg5: memref<5x32x32xf32, #tpu.memory_space<vmem>>, %arg6: memref<2x4xf32, #tpu.memory_space<vmem>>, %arg7: memref<6x32xf32, #tpu.memory_space<vmem>>, %arg8: memref<2x32xf32, #tpu.memory_space<vmem>>) attributes {dimension_semantics = [#tpu.dimension_semantics<arbitrary>], iteration_bounds = array<i64: 1>, scalar_prefetch = 0 : i64, scratch_operands = 0 : i64, tpu.core_type = #tpu.core_type<tc>, window_params = [{pipeline_mode = #tpu.pipeline_mode<synchronous>, transform_indices = @transform_0, window_bounds = array<i64: 36, 32>}, {pipeline_mode = #tpu.pipeline_mode<synchronous>, transform_indices = @transform_1, window_bounds = array<i64: 5, 12, 36>}, {pipeline_mode = #tpu.pipeline_mode<synchronous>, transform_indices = @transform_2, window_bounds = array<i64: 5, 32, 32>}, {pipeline_mode = #tpu.pipeline_mode<synchronous>, transform_indices = @transform_3, window_bounds = array<i64: 5, 4, 12>}, {pipeline_mode = #tpu.pipeline_mode<synchronous>, transform_indices = @transform_4, window_bounds = array<i64: 5, 32, 32>}, {pipeline_mode = #tpu.pipeline_mode<synchronous>, transform_indices = @transform_5, window_bounds = array<i64: 2, 4>}, {pipeline_mode = #tpu.pipeline_mode<synchronous>, transform_indices = @transform_6, window_bounds = array<i64: 6, 32>}, {pipeline_mode = #tpu.pipeline_mode<synchronous>, transform_indices = @transform_7, window_bounds = array<i64: 2, 32>}]} {
    %c0 = arith.constant 0 : index
    %c0_0 = arith.constant 0 : index
    %0 = vector.load %arg7[%c0, %c0_0] : memref<6x32xf32, #tpu.memory_space<vmem>>, vector<6x32xf32>
    %c0_1 = arith.constant 0 : index
    %c0_2 = arith.constant 0 : index
    %1 = vector.load %arg1[%c0_1, %c0_2] : memref<36x32xf32, #tpu.memory_space<vmem>>, vector<36x32xf32>
    %2 = vector.extract_strided_slice %0 {offsets = [0, 0], sizes = [1, 32], strides = [1, 1]} : vector<6x32xf32> to vector<1x32xf32>
    %3 = vector.extract_strided_slice %0 {offsets = [1, 0], sizes = [1, 32], strides = [1, 1]} : vector<6x32xf32> to vector<1x32xf32>
    %4 = vector.extract_strided_slice %0 {offsets = [2, 0], sizes = [1, 32], strides = [1, 1]} : vector<6x32xf32> to vector<1x32xf32>
    %c0_3 = arith.constant 0 : index
    %c0_4 = arith.constant 0 : index
    %c0_5 = arith.constant 0 : index
    %5 = vector.load %arg2[%c0_3, %c0_4, %c0_5] : memref<5x12x36xf32, #tpu.memory_space<vmem>>, vector<1x12x36xf32>
    %6 = vector.shape_cast %5 : vector<1x12x36xf32> to vector<12x36xf32>
    %cst = arith.constant dense<0.000000e+00> : vector<12x32xf32>
    %7 = tpu.matmul %6, %1, %cst {dimension_numbers = #tpu.dot_dimension_numbers<[1], [0], [0], [1], [0, 0, 1, 1], [], []>} : vector<12x36xf32>, vector<36x32xf32>, vector<12x32xf32> -> vector<12x32xf32>
    %c0_6 = arith.constant 0 : index
    %c0_7 = arith.constant 0 : index
    %c0_8 = arith.constant 0 : index
    %8 = vector.load %arg3[%c0_6, %c0_7, %c0_8] : memref<5x32x32xf32, #tpu.memory_space<vmem>>, vector<1x32x32xf32>
    %9 = vector.shape_cast %8 : vector<1x32x32xf32> to vector<32x32xf32>
    %cst_9 = arith.constant dense<0.000000e+00> : vector<12x32xf32>
    %10 = tpu.matmul %7, %9, %cst_9 {dimension_numbers = #tpu.dot_dimension_numbers<[1], [0], [0], [1], [0, 0, 1, 1], [], []>} : vector<12x32xf32>, vector<32x32xf32>, vector<12x32xf32> -> vector<12x32xf32>
    %c1 = arith.constant 1 : index
    %c0_10 = arith.constant 0 : index
    %c0_11 = arith.constant 0 : index
    %11 = vector.load %arg2[%c1, %c0_10, %c0_11] : memref<5x12x36xf32, #tpu.memory_space<vmem>>, vector<1x12x36xf32>
    %12 = vector.shape_cast %11 : vector<1x12x36xf32> to vector<12x36xf32>
    %cst_12 = arith.constant dense<0.000000e+00> : vector<12x32xf32>
    %13 = tpu.matmul %12, %1, %cst_12 {dimension_numbers = #tpu.dot_dimension_numbers<[1], [0], [0], [1], [0, 0, 1, 1], [], []>} : vector<12x36xf32>, vector<36x32xf32>, vector<12x32xf32> -> vector<12x32xf32>
    %c1_13 = arith.constant 1 : index
    %c0_14 = arith.constant 0 : index
    %c0_15 = arith.constant 0 : index
    %14 = vector.load %arg3[%c1_13, %c0_14, %c0_15] : memref<5x32x32xf32, #tpu.memory_space<vmem>>, vector<1x32x32xf32>
    %15 = vector.shape_cast %14 : vector<1x32x32xf32> to vector<32x32xf32>
    %cst_16 = arith.constant dense<0.000000e+00> : vector<12x32xf32>
    %16 = tpu.matmul %13, %15, %cst_16 {dimension_numbers = #tpu.dot_dimension_numbers<[1], [0], [0], [1], [0, 0, 1, 1], [], []>} : vector<12x32xf32>, vector<32x32xf32>, vector<12x32xf32> -> vector<12x32xf32>
    %17 = arith.addf %10, %16 : vector<12x32xf32>
    %c2 = arith.constant 2 : index
    %c0_17 = arith.constant 0 : index
    %c0_18 = arith.constant 0 : index
    %18 = vector.load %arg2[%c2, %c0_17, %c0_18] : memref<5x12x36xf32, #tpu.memory_space<vmem>>, vector<1x12x36xf32>
    %19 = vector.shape_cast %18 : vector<1x12x36xf32> to vector<12x36xf32>
    %cst_19 = arith.constant dense<0.000000e+00> : vector<12x32xf32>
    %20 = tpu.matmul %19, %1, %cst_19 {dimension_numbers = #tpu.dot_dimension_numbers<[1], [0], [0], [1], [0, 0, 1, 1], [], []>} : vector<12x36xf32>, vector<36x32xf32>, vector<12x32xf32> -> vector<12x32xf32>
    %c2_20 = arith.constant 2 : index
    %c0_21 = arith.constant 0 : index
    %c0_22 = arith.constant 0 : index
    %21 = vector.load %arg3[%c2_20, %c0_21, %c0_22] : memref<5x32x32xf32, #tpu.memory_space<vmem>>, vector<1x32x32xf32>
    %22 = vector.shape_cast %21 : vector<1x32x32xf32> to vector<32x32xf32>
    %cst_23 = arith.constant dense<0.000000e+00> : vector<12x32xf32>
    %23 = tpu.matmul %20, %22, %cst_23 {dimension_numbers = #tpu.dot_dimension_numbers<[1], [0], [0], [1], [0, 0, 1, 1], [], []>} : vector<12x32xf32>, vector<32x32xf32>, vector<12x32xf32> -> vector<12x32xf32>
    %24 = arith.addf %17, %23 : vector<12x32xf32>
    %c3 = arith.constant 3 : index
    %c0_24 = arith.constant 0 : index
    %c0_25 = arith.constant 0 : index
    %25 = vector.load %arg2[%c3, %c0_24, %c0_25] : memref<5x12x36xf32, #tpu.memory_space<vmem>>, vector<1x12x36xf32>
    %26 = vector.shape_cast %25 : vector<1x12x36xf32> to vector<12x36xf32>
    %cst_26 = arith.constant dense<0.000000e+00> : vector<12x32xf32>
    %27 = tpu.matmul %26, %1, %cst_26 {dimension_numbers = #tpu.dot_dimension_numbers<[1], [0], [0], [1], [0, 0, 1, 1], [], []>} : vector<12x36xf32>, vector<36x32xf32>, vector<12x32xf32> -> vector<12x32xf32>
    %c3_27 = arith.constant 3 : index
    %c0_28 = arith.constant 0 : index
    %c0_29 = arith.constant 0 : index
    %28 = vector.load %arg3[%c3_27, %c0_28, %c0_29] : memref<5x32x32xf32, #tpu.memory_space<vmem>>, vector<1x32x32xf32>
    %29 = vector.shape_cast %28 : vector<1x32x32xf32> to vector<32x32xf32>
    %cst_30 = arith.constant dense<0.000000e+00> : vector<12x32xf32>
    %30 = tpu.matmul %27, %29, %cst_30 {dimension_numbers = #tpu.dot_dimension_numbers<[1], [0], [0], [1], [0, 0, 1, 1], [], []>} : vector<12x32xf32>, vector<32x32xf32>, vector<12x32xf32> -> vector<12x32xf32>
    %31 = arith.addf %24, %30 : vector<12x32xf32>
    %c4 = arith.constant 4 : index
    %c0_31 = arith.constant 0 : index
    %c0_32 = arith.constant 0 : index
    %32 = vector.load %arg2[%c4, %c0_31, %c0_32] : memref<5x12x36xf32, #tpu.memory_space<vmem>>, vector<1x12x36xf32>
    %33 = vector.shape_cast %32 : vector<1x12x36xf32> to vector<12x36xf32>
    %cst_33 = arith.constant dense<0.000000e+00> : vector<12x32xf32>
    %34 = tpu.matmul %33, %1, %cst_33 {dimension_numbers = #tpu.dot_dimension_numbers<[1], [0], [0], [1], [0, 0, 1, 1], [], []>} : vector<12x36xf32>, vector<36x32xf32>, vector<12x32xf32> -> vector<12x32xf32>
    %c4_34 = arith.constant 4 : index
    %c0_35 = arith.constant 0 : index
    %c0_36 = arith.constant 0 : index
    %35 = vector.load %arg3[%c4_34, %c0_35, %c0_36] : memref<5x32x32xf32, #tpu.memory_space<vmem>>, vector<1x32x32xf32>
    %36 = vector.shape_cast %35 : vector<1x32x32xf32> to vector<32x32xf32>
    %cst_37 = arith.constant dense<0.000000e+00> : vector<12x32xf32>
    %37 = tpu.matmul %34, %36, %cst_37 {dimension_numbers = #tpu.dot_dimension_numbers<[1], [0], [0], [1], [0, 0, 1, 1], [], []>} : vector<12x32xf32>, vector<32x32xf32>, vector<12x32xf32> -> vector<12x32xf32>
    %38 = arith.addf %31, %37 : vector<12x32xf32>
    %39 = vector.broadcast %2 : vector<1x32xf32> to vector<12x32xf32>
    %40 = arith.addf %38, %39 : vector<12x32xf32>
    %cst_38 = arith.constant 0.000000e+00 : f32
    %41 = vector.broadcast %cst_38 : f32 to vector<12x32xf32>
    %42 = arith.maximumf %40, %41 : vector<12x32xf32>
    %cst_39 = arith.constant dense<0.000000e+00> : vector<12xf32>
    %43 = vector.multi_reduction <add>, %42, %cst_39 [1] : vector<12x32xf32> to vector<12xf32>
    %44 = vector.shape_cast %43 : vector<12xf32> to vector<12x1xf32>
    %cst_40 = arith.constant 3.200000e+01 : f32
    %45 = vector.broadcast %cst_40 : f32 to vector<12x1xf32>
    %46 = arith.divf %44, %45 : vector<12x1xf32>
    %47 = vector.broadcast %46 : vector<12x1xf32> to vector<12x32xf32>
    %48 = arith.subf %42, %47 : vector<12x32xf32>
    %49 = arith.mulf %48, %48 : vector<12x32xf32>
    %cst_41 = arith.constant dense<0.000000e+00> : vector<12xf32>
    %50 = vector.multi_reduction <add>, %49, %cst_41 [1] : vector<12x32xf32> to vector<12xf32>
    %51 = vector.shape_cast %50 : vector<12xf32> to vector<12x1xf32>
    %cst_42 = arith.constant 3.200000e+01 : f32
    %52 = vector.broadcast %cst_42 : f32 to vector<12x1xf32>
    %53 = arith.divf %51, %52 : vector<12x1xf32>
    %54 = vector.broadcast %46 : vector<12x1xf32> to vector<12x32xf32>
    %55 = arith.subf %42, %54 : vector<12x32xf32>
    %cst_43 = arith.constant 9.99999974E-6 : f32
    %56 = vector.broadcast %cst_43 : f32 to vector<12x1xf32>
    %57 = arith.addf %53, %56 : vector<12x1xf32>
    %58 = math.rsqrt %57 : vector<12x1xf32>
    %59 = vector.broadcast %58 : vector<12x1xf32> to vector<12x32xf32>
    %60 = arith.mulf %55, %59 : vector<12x32xf32>
    %61 = vector.broadcast %3 : vector<1x32xf32> to vector<12x32xf32>
    %62 = arith.mulf %60, %61 : vector<12x32xf32>
    %63 = vector.broadcast %4 : vector<1x32xf32> to vector<12x32xf32>
    %64 = arith.addf %62, %63 : vector<12x32xf32>
    %65 = vector.extract_strided_slice %0 {offsets = [3, 0], sizes = [1, 32], strides = [1, 1]} : vector<6x32xf32> to vector<1x32xf32>
    %66 = vector.extract_strided_slice %0 {offsets = [4, 0], sizes = [1, 32], strides = [1, 1]} : vector<6x32xf32> to vector<1x32xf32>
    %67 = vector.extract_strided_slice %0 {offsets = [5, 0], sizes = [1, 32], strides = [1, 1]} : vector<6x32xf32> to vector<1x32xf32>
    %c0_44 = arith.constant 0 : index
    %c0_45 = arith.constant 0 : index
    %c0_46 = arith.constant 0 : index
    %68 = vector.load %arg4[%c0_44, %c0_45, %c0_46] : memref<5x4x12xf32, #tpu.memory_space<vmem>>, vector<1x4x12xf32>
    %69 = vector.shape_cast %68 : vector<1x4x12xf32> to vector<4x12xf32>
    %cst_47 = arith.constant dense<0.000000e+00> : vector<4x32xf32>
    %70 = tpu.matmul %69, %64, %cst_47 {dimension_numbers = #tpu.dot_dimension_numbers<[1], [0], [0], [1], [0, 0, 1, 1], [], []>} : vector<4x12xf32>, vector<12x32xf32>, vector<4x32xf32> -> vector<4x32xf32>
    %c0_48 = arith.constant 0 : index
    %c0_49 = arith.constant 0 : index
    %c0_50 = arith.constant 0 : index
    %71 = vector.load %arg5[%c0_48, %c0_49, %c0_50] : memref<5x32x32xf32, #tpu.memory_space<vmem>>, vector<1x32x32xf32>
    %72 = vector.shape_cast %71 : vector<1x32x32xf32> to vector<32x32xf32>
    %cst_51 = arith.constant dense<0.000000e+00> : vector<4x32xf32>
    %73 = tpu.matmul %70, %72, %cst_51 {dimension_numbers = #tpu.dot_dimension_numbers<[1], [0], [0], [1], [0, 0, 1, 1], [], []>} : vector<4x32xf32>, vector<32x32xf32>, vector<4x32xf32> -> vector<4x32xf32>
    %c1_52 = arith.constant 1 : index
    %c0_53 = arith.constant 0 : index
    %c0_54 = arith.constant 0 : index
    %74 = vector.load %arg4[%c1_52, %c0_53, %c0_54] : memref<5x4x12xf32, #tpu.memory_space<vmem>>, vector<1x4x12xf32>
    %75 = vector.shape_cast %74 : vector<1x4x12xf32> to vector<4x12xf32>
    %cst_55 = arith.constant dense<0.000000e+00> : vector<4x32xf32>
    %76 = tpu.matmul %75, %64, %cst_55 {dimension_numbers = #tpu.dot_dimension_numbers<[1], [0], [0], [1], [0, 0, 1, 1], [], []>} : vector<4x12xf32>, vector<12x32xf32>, vector<4x32xf32> -> vector<4x32xf32>
    %c1_56 = arith.constant 1 : index
    %c0_57 = arith.constant 0 : index
    %c0_58 = arith.constant 0 : index
    %77 = vector.load %arg5[%c1_56, %c0_57, %c0_58] : memref<5x32x32xf32, #tpu.memory_space<vmem>>, vector<1x32x32xf32>
    %78 = vector.shape_cast %77 : vector<1x32x32xf32> to vector<32x32xf32>
    %cst_59 = arith.constant dense<0.000000e+00> : vector<4x32xf32>
    %79 = tpu.matmul %76, %78, %cst_59 {dimension_numbers = #tpu.dot_dimension_numbers<[1], [0], [0], [1], [0, 0, 1, 1], [], []>} : vector<4x32xf32>, vector<32x32xf32>, vector<4x32xf32> -> vector<4x32xf32>
    %80 = arith.addf %73, %79 : vector<4x32xf32>
    %c2_60 = arith.constant 2 : index
    %c0_61 = arith.constant 0 : index
    %c0_62 = arith.constant 0 : index
    %81 = vector.load %arg4[%c2_60, %c0_61, %c0_62] : memref<5x4x12xf32, #tpu.memory_space<vmem>>, vector<1x4x12xf32>
    %82 = vector.shape_cast %81 : vector<1x4x12xf32> to vector<4x12xf32>
    %cst_63 = arith.constant dense<0.000000e+00> : vector<4x32xf32>
    %83 = tpu.matmul %82, %64, %cst_63 {dimension_numbers = #tpu.dot_dimension_numbers<[1], [0], [0], [1], [0, 0, 1, 1], [], []>} : vector<4x12xf32>, vector<12x32xf32>, vector<4x32xf32> -> vector<4x32xf32>
    %c2_64 = arith.constant 2 : index
    %c0_65 = arith.constant 0 : index
    %c0_66 = arith.constant 0 : index
    %84 = vector.load %arg5[%c2_64, %c0_65, %c0_66] : memref<5x32x32xf32, #tpu.memory_space<vmem>>, vector<1x32x32xf32>
    %85 = vector.shape_cast %84 : vector<1x32x32xf32> to vector<32x32xf32>
    %cst_67 = arith.constant dense<0.000000e+00> : vector<4x32xf32>
    %86 = tpu.matmul %83, %85, %cst_67 {dimension_numbers = #tpu.dot_dimension_numbers<[1], [0], [0], [1], [0, 0, 1, 1], [], []>} : vector<4x32xf32>, vector<32x32xf32>, vector<4x32xf32> -> vector<4x32xf32>
    %87 = arith.addf %80, %86 : vector<4x32xf32>
    %c3_68 = arith.constant 3 : index
    %c0_69 = arith.constant 0 : index
    %c0_70 = arith.constant 0 : index
    %88 = vector.load %arg4[%c3_68, %c0_69, %c0_70] : memref<5x4x12xf32, #tpu.memory_space<vmem>>, vector<1x4x12xf32>
    %89 = vector.shape_cast %88 : vector<1x4x12xf32> to vector<4x12xf32>
    %cst_71 = arith.constant dense<0.000000e+00> : vector<4x32xf32>
    %90 = tpu.matmul %89, %64, %cst_71 {dimension_numbers = #tpu.dot_dimension_numbers<[1], [0], [0], [1], [0, 0, 1, 1], [], []>} : vector<4x12xf32>, vector<12x32xf32>, vector<4x32xf32> -> vector<4x32xf32>
    %c3_72 = arith.constant 3 : index
    %c0_73 = arith.constant 0 : index
    %c0_74 = arith.constant 0 : index
    %91 = vector.load %arg5[%c3_72, %c0_73, %c0_74] : memref<5x32x32xf32, #tpu.memory_space<vmem>>, vector<1x32x32xf32>
    %92 = vector.shape_cast %91 : vector<1x32x32xf32> to vector<32x32xf32>
    %cst_75 = arith.constant dense<0.000000e+00> : vector<4x32xf32>
    %93 = tpu.matmul %90, %92, %cst_75 {dimension_numbers = #tpu.dot_dimension_numbers<[1], [0], [0], [1], [0, 0, 1, 1], [], []>} : vector<4x32xf32>, vector<32x32xf32>, vector<4x32xf32> -> vector<4x32xf32>
    %94 = arith.addf %87, %93 : vector<4x32xf32>
    %c4_76 = arith.constant 4 : index
    %c0_77 = arith.constant 0 : index
    %c0_78 = arith.constant 0 : index
    %95 = vector.load %arg4[%c4_76, %c0_77, %c0_78] : memref<5x4x12xf32, #tpu.memory_space<vmem>>, vector<1x4x12xf32>
    %96 = vector.shape_cast %95 : vector<1x4x12xf32> to vector<4x12xf32>
    %cst_79 = arith.constant dense<0.000000e+00> : vector<4x32xf32>
    %97 = tpu.matmul %96, %64, %cst_79 {dimension_numbers = #tpu.dot_dimension_numbers<[1], [0], [0], [1], [0, 0, 1, 1], [], []>} : vector<4x12xf32>, vector<12x32xf32>, vector<4x32xf32> -> vector<4x32xf32>
    %c4_80 = arith.constant 4 : index
    %c0_81 = arith.constant 0 : index
    %c0_82 = arith.constant 0 : index
    %98 = vector.load %arg5[%c4_80, %c0_81, %c0_82] : memref<5x32x32xf32, #tpu.memory_space<vmem>>, vector<1x32x32xf32>
    %99 = vector.shape_cast %98 : vector<1x32x32xf32> to vector<32x32xf32>
    %cst_83 = arith.constant dense<0.000000e+00> : vector<4x32xf32>
    %100 = tpu.matmul %97, %99, %cst_83 {dimension_numbers = #tpu.dot_dimension_numbers<[1], [0], [0], [1], [0, 0, 1, 1], [], []>} : vector<4x32xf32>, vector<32x32xf32>, vector<4x32xf32> -> vector<4x32xf32>
    %101 = arith.addf %94, %100 : vector<4x32xf32>
    %102 = vector.broadcast %65 : vector<1x32xf32> to vector<4x32xf32>
    %103 = arith.addf %101, %102 : vector<4x32xf32>
    %cst_84 = arith.constant 0.000000e+00 : f32
    %104 = vector.broadcast %cst_84 : f32 to vector<4x32xf32>
    %105 = arith.maximumf %103, %104 : vector<4x32xf32>
    %cst_85 = arith.constant dense<0.000000e+00> : vector<4xf32>
    %106 = vector.multi_reduction <add>, %105, %cst_85 [1] : vector<4x32xf32> to vector<4xf32>
    %107 = vector.shape_cast %106 : vector<4xf32> to vector<4x1xf32>
    %cst_86 = arith.constant 3.200000e+01 : f32
    %108 = vector.broadcast %cst_86 : f32 to vector<4x1xf32>
    %109 = arith.divf %107, %108 : vector<4x1xf32>
    %110 = vector.broadcast %109 : vector<4x1xf32> to vector<4x32xf32>
    %111 = arith.subf %105, %110 : vector<4x32xf32>
    %112 = arith.mulf %111, %111 : vector<4x32xf32>
    %cst_87 = arith.constant dense<0.000000e+00> : vector<4xf32>
    %113 = vector.multi_reduction <add>, %112, %cst_87 [1] : vector<4x32xf32> to vector<4xf32>
    %114 = vector.shape_cast %113 : vector<4xf32> to vector<4x1xf32>
    %cst_88 = arith.constant 3.200000e+01 : f32
    %115 = vector.broadcast %cst_88 : f32 to vector<4x1xf32>
    %116 = arith.divf %114, %115 : vector<4x1xf32>
    %117 = vector.broadcast %109 : vector<4x1xf32> to vector<4x32xf32>
    %118 = arith.subf %105, %117 : vector<4x32xf32>
    %cst_89 = arith.constant 9.99999974E-6 : f32
    %119 = vector.broadcast %cst_89 : f32 to vector<4x1xf32>
    %120 = arith.addf %116, %119 : vector<4x1xf32>
    %121 = math.rsqrt %120 : vector<4x1xf32>
    %122 = vector.broadcast %121 : vector<4x1xf32> to vector<4x32xf32>
    %123 = arith.mulf %118, %122 : vector<4x32xf32>
    %124 = vector.broadcast %66 : vector<1x32xf32> to vector<4x32xf32>
    %125 = arith.mulf %123, %124 : vector<4x32xf32>
    %126 = vector.broadcast %67 : vector<1x32xf32> to vector<4x32xf32>
    %127 = arith.addf %125, %126 : vector<4x32xf32>
    %c0_90 = arith.constant 0 : index
    %c0_91 = arith.constant 0 : index
    %128 = vector.load %arg6[%c0_90, %c0_91] : memref<2x4xf32, #tpu.memory_space<vmem>>, vector<2x4xf32>
    %cst_92 = arith.constant dense<0.000000e+00> : vector<2x32xf32>
    %129 = tpu.matmul %128, %127, %cst_92 {dimension_numbers = #tpu.dot_dimension_numbers<[1], [0], [0], [1], [0, 0, 1, 1], [], []>} : vector<2x4xf32>, vector<4x32xf32>, vector<2x32xf32> -> vector<2x32xf32>
    %c0_93 = arith.constant 0 : index
    %c0_94 = arith.constant 0 : index
    %130 = vector.load %arg8[%c0_93, %c0_94] : memref<2x32xf32, #tpu.memory_space<vmem>>, vector<2x32xf32>
    tpu.vector_store %arg8[%c0_93, %c0_94], %129 {strides = array<i32>} : memref<2x32xf32, #tpu.memory_space<vmem>>, vector<2x32xf32>,
    return
  }
  func.func @transform_0(%arg0: i32) -> (i32, i32) {
    %c0_i32 = arith.constant 0 : i32
    %c0_i32_0 = arith.constant 0 : i32
    %c0_i32_1 = arith.constant 0 : i32
    return %c0_i32, %c0_i32_0 : i32, i32
  }
  func.func @transform_1(%arg0: i32) -> (i32, i32, i32) {
    %c0_i32 = arith.constant 0 : i32
    %c0_i32_0 = arith.constant 0 : i32
    %c0_i32_1 = arith.constant 0 : i32
    %c0_i32_2 = arith.constant 0 : i32
    return %c0_i32, %c0_i32_0, %c0_i32_1 : i32, i32, i32
  }
  func.func @transform_2(%arg0: i32) -> (i32, i32, i32) {
    %c0_i32 = arith.constant 0 : i32
    %c0_i32_0 = arith.constant 0 : i32
    %c0_i32_1 = arith.constant 0 : i32
    %c0_i32_2 = arith.constant 0 : i32
    return %c0_i32, %c0_i32_0, %c0_i32_1 : i32, i32, i32
  }
  func.func @transform_3(%arg0: i32) -> (i32, i32, i32) {
    %c0_i32 = arith.constant 0 : i32
    %c0_i32_0 = arith.constant 0 : i32
    %c0_i32_1 = arith.constant 0 : i32
    %c0_i32_2 = arith.constant 0 : i32
    return %c0_i32, %c0_i32_0, %c0_i32_1 : i32, i32, i32
  }
  func.func @transform_4(%arg0: i32) -> (i32, i32, i32) {
    %c0_i32 = arith.constant 0 : i32
    %c0_i32_0 = arith.constant 0 : i32
    %c0_i32_1 = arith.constant 0 : i32
    %c0_i32_2 = arith.constant 0 : i32
    return %c0_i32, %c0_i32_0, %c0_i32_1 : i32, i32, i32
  }
  func.func @transform_5(%arg0: i32) -> (i32, i32) {
    %c0_i32 = arith.constant 0 : i32
    %c0_i32_0 = arith.constant 0 : i32
    %c0_i32_1 = arith.constant 0 : i32
    return %c0_i32, %c0_i32_0 : i32, i32
  }
  func.func @transform_6(%arg0: i32) -> (i32, i32) {
    %c0_i32 = arith.constant 0 : i32
    %c0_i32_0 = arith.constant 0 : i32
    %c0_i32_1 = arith.constant 0 : i32
    return %c0_i32, %c0_i32_0 : i32, i32
  }
  func.func @transform_7(%arg0: i32) -> (i32, i32) {
    %c0_i32 = arith.constant 0 : i32
    %c0_i32_0 = arith.constant 0 : i32
    %c0_i32_1 = arith.constant 0 : i32
    return %c0_i32, %c0_i32_0 : i32, i32
  }
}

</mosaic_0001>

<bundles_post_ra>
// kernel: tpu_custom_call.1
= control target key start
LH: loop header
LB: loop body
LE: loop exit
PB: predicated region body
PF: predicated region fallthrough
CT: control target
= control target key end

     0   :  { %12 = vsyncpa [#allocation3], 0  ;;  %s2766_s0 = inlined_call_operand.vmem [shape: f32[36,32], index: 0, kind: input, shape index: {}]   ;;  %s2767_s1 = inlined_call_operand.hbm [shape: f32[5,12,36], index: 1, kind: input, shape index: {}]   ;;  %s2768_s2 = inlined_call_operand.hbm [shape: f32[5,32,32], index: 2, kind: input, shape index: {}]   ;;  %s2769_s3 = inlined_call_operand.vmem [shape: f32[5,4,12], index: 3, kind: input, shape index: {}]   ;;  %s2770_s4 = inlined_call_operand.hbm [shape: f32[5,32,32], index: 4, kind: input, shape index: {}]   ;;  %s2771_s5 = inlined_call_operand.vmem [shape: f32[2,4], index: 5, kind: input, shape index: {}]   ;;  %s2772_s6 = inlined_call_operand.vmem [shape: f32[6,32], index: 6, kind: input, shape index: {}]   ;;  %s2773_s7 = inlined_call_operand.hbm [shape: f32[2,32], index: 7, kind: output, shape index: {}]  }
   0x1   :  { %13 = vsyncpa [#allocation6], 0 }
   0x2   :  { %14 = vsyncpa [#allocation4], 0  ;;  %s2493_s24 = smov [#allocation5]   ;;  %s2494_s26 = smov [#allocation2]  }
   0x3   :  { %s34_s25 = sshll.u32 %s2493_s24, 4  ;;  %s22_s27 = sshll.u32 %s2494_s26, 4  ;;  %s35_s25 = int_to_ptr.vmem [resolvable:$true] %s34_s25  ;;  %s2543_s27 = int_to_ptr.vmem [resolvable:$true] %s22_s27 }
   0x4   :  { %s2399_s30 = scalar_lea.hbm %s2768_s2, 2560 }
   0x5   :  { %p2400_p0 = scmp.ne.s32.totalorder %s2768_s2, %s2399_s30  ;;  %p2403_p1 = scmp.lt.u32.totalorder %s2399_s30, %s2768_s2 }
   0x7   :  { %p2405_p2 = pnand %p2403_p1, %p2400_p0 }
   0x9   :  { %2408 = shalt.err (!%p2405_p2)
}
   0xa   :  { %s2409_s12 = scalar_lea.vmem %s35_s25, 2560  ;;  %p2414_p4 = scmp.lt.s32.totalorder %s35_s25, %s35_s25 }
   0xb   :  { %p2410_p3 = scmp.ne.s32.totalorder %s35_s25, %s2409_s12  ;;  %p2415_p5 = scmp.lt.s32.totalorder %s2409_s12, %s2409_s12 }
   0xd   :  { %p2416_p6 = por %p2415_p5, %p2414_p4 }
   0xf   :  { %p2417_p7 = pnand %p2416_p6, %p2410_p3 }
  0x11   :  { %2420 = shalt.err (!%p2417_p7)
}
  0x12   :  { %s2495_s13 = smov 128   ;;  %s2496_s14 = smov 8  }
  0x13   :  { %40 = dma.hbm_to_vmem [thread:$0]  %s2768_s2, 2560, %s35_s25, [#allocation6], %s2495_s13, %s2495_s13, %s2496_s14  }
  0x14   :  { %s2421_s19 = scalar_lea.hbm %s2767_s1, 1280 }
  0x15   :  { %p2422_p8 = scmp.ne.s32.totalorder %s2767_s1, %s2421_s19  ;;  %p2425_p9 = scmp.lt.u32.totalorder %s2421_s19, %s2767_s1 }
  0x17   :  { %p2427_p10 = pnand %p2425_p9, %p2422_p8 }
  0x19   :  { %2430 = shalt.err (!%p2427_p10)
}
  0x1a   :  { %s2431_s24 = scalar_lea.vmem %s2543_s27, 1280  ;;  %p2436_p12 = scmp.lt.s32.totalorder %s2543_s27, %s2543_s27 }
  0x1b   :  { %p2432_p11 = scmp.ne.s32.totalorder %s2543_s27, %s2431_s24  ;;  %p2437_p13 = scmp.lt.s32.totalorder %s2431_s24, %s2431_s24 }
  0x1d   :  { %p2438_p0 = por %p2437_p13, %p2436_p12 }
  0x1f   :  { %p2439_p1 = pnand %p2438_p0, %p2432_p11 }
  0x21   :  { %2442 = shalt.err (!%p2439_p1)
}
  0x22   :  { %28 = dma.hbm_to_vmem [thread:$0]  %s2767_s1, 1280, %s2543_s27, [#allocation3], %s2495_s13, %s2495_s13, %s2496_s14  }
  0x23   :  { %s2497_s26 = smov [#allocation7]   ;;  %s2443_s8 = scalar_lea.hbm %s2770_s4, 2560 }
  0x24   :  { %s48_s28 = sshll.u32 %s2497_s26, 4  ;;  %p2444_p2 = scmp.ne.s32.totalorder %s2770_s4, %s2443_s8  ;;  %s49_s28 = int_to_ptr.vmem [resolvable:$true] %s48_s28 }
  0x25   :  { %p2447_p3 = scmp.lt.u32.totalorder %s2443_s8, %s2770_s4 }
  0x27   :  { %p2449_p4 = pnand %p2447_p3, %p2444_p2 }
  0x29   :  { %2452 = shalt.err (!%p2449_p4)
}
  0x2a   :  { %s2453_s15 = scalar_lea.vmem %s49_s28, 2560  ;;  %p2458_p6 = scmp.lt.s32.totalorder %s49_s28, %s49_s28 }
  0x2b   :  { %p2454_p5 = scmp.ne.s32.totalorder %s49_s28, %s2453_s15  ;;  %p2459_p7 = scmp.lt.s32.totalorder %s2453_s15, %s2453_s15 }
  0x2d   :  { %p2460_p8 = por %p2459_p7, %p2458_p6 }
  0x2f   :  { %p2461_p9 = pnand %p2460_p8, %p2454_p5 }
  0x31   :  { %2464 = shalt.err (!%p2461_p9)
}
  0x32   :  { %54 = dma.hbm_to_vmem [thread:$0]  %s2770_s4, 2560, %s49_s28, [#allocation6], %s2495_s13, %s2495_s13, %s2496_s14  }
  0x33   :  { %2487 = dma.done.wait [#allocation3], 1280  }
  0x34   :  { %2488 = vsyncadd [#allocation3], 4294966016 }
  0x35   :  { %2489 = dma.done.wait [#allocation6], 5120  }
  0x36   :  { %2490 = vsyncadd [#allocation6], 4294962176  ;;  %vm76_vm0 = vcmask 293888   ;;  %v69_v0 = vld [vmem:[%s2766_s0] sm:$0xff]  ;;  %v70_v1 = vld [vmem:[%s2766_s0 + $0x8] sm:$0xff]  ;;  %vm83_vm1 = vcmask 1043456   ;;  %v934_v57 = vlaneseq }
  0x37   :  { %v71_v2 = vld [vmem:[%s2766_s0 + $0x10] sm:$0xff]  ;;  %v2245_v3 = vpack.c.bf16 %v70_v1, %v69_v0  ;;  %v72_v4 = vld [vmem:[%s2766_s0 + $0x18] sm:$0xff]  ;;  %v74_v7 = vld [vmem:[#allocation2] sm:$0xff]  ;;  %vm255_vm2 = vcmask 261120   ;;  %vm945_vm3 = vcmask 257024   ;;  %vm2499_vm4 = vmmov 0  }
  0x38   :  { %v167_v5 = vld [vmem:[#allocation2 + $0x10] sm:$0xff]  ;;  %v2249_v6 = vpack.c.bf16 %v72_v4, %v71_v2  ;;  %v73_v8 = vld [vmem:[%s2766_s0 + $0x20] sm:$0xf]  ;;  %2040 = vmatprep.mubr.msk.f32.mxu0 %vm76_vm0, %v74_v7  ;;  %v252_v10 = vld [vmem:[#allocation5 + $0x28] sm:$0xff]  ;;  %v2640_v58 = vshrl.u32 %v934_v57, 7  ;;  %vm2501_vm5 = vmmov 1  }
  0x39   :  { %2053 = vmatprep.mubr.msk.f32.mxu1 %vm76_vm0, %v167_v5  ;;  %2254 = vmatprep.subr.bf16.mxu1 %v2245_v3  ;;  %v251_v9 = vld [vmem:[#allocation5 + $0x20] sm:$0xff]  ;;  %v168_v11 = vld [vmem:[#allocation2 + $0x18] sm:$0xf]  ;;  %v75_v12 = vld [vmem:[#allocation2 + $0x8] sm:$0xf]  ;;  %vm983_vm7 = vcmask 97280  }
  0x3a   :  { %2246 = vmatprep.subr.bf16.mxu0 %v2245_v3  ;;  %2256 = vmatpush3.bf16.msra.mxu1 %v2245_v3  ;;  %v253_v13 = vld [vmem:[#allocation5 + $0x30] sm:$0xff]  ;;  %v254_v14 = vld [vmem:[#allocation5 + $0x38] sm:$0xff]  ;;  %v2261_v16 = vpack.c.bf16 %v252_v10, %v251_v9  ;;  %v591_v19 = vld [vmem:[#allocation2 + $0x30] sm:$0xff]  ;;  %v936_v59 = vsub.s32 0, %v2640_v58  ;;  %vm1782_vm8 = vcmask 31744   ;;  %s2502_s11 = smov [#allocation8]  }
  0x3b   :  { %2248 = vmatpush3.bf16.msra.mxu0 %v2245_v3  ;;  %2258 = vmatprep.subr.bf16.mxu1 %v2249_v6  ;;  %v419_v15 = vld [vmem:[#allocation2 + $0x20] sm:$0xff]  ;;  %v2265_v17 = vpack.c.bf16 %v254_v14, %v253_v13  ;;  %v420_v18 = vld [vmem:[#allocation2 + $0x28] sm:$0xf]  ;;  %v592_v20 = vld [vmem:[#allocation2 + $0x38] sm:$0xf]  ;;  %s1867_s12 = sshll.u32 %s2502_s11, 4  ;;  %s1868_s12 = int_to_ptr.vmem [resolvable:$true] %s1867_s12 }
  0x3c   :  { %2250 = vmatprep.subr.bf16.mxu0 %v2249_v6  ;;  %v763_v21 = vld [vmem:[#allocation2 + $0x40] sm:$0xff]  ;;  %v764_v22 = vld [vmem:[#allocation2 + $0x48] sm:$0xf]  ;;  %v162_v23 = vld [vmem:[#allocation5] sm:$0xff]  ;;  %vm1859_vm9 = vcmask 254976   ;;  %s2465_s15 = scalar_lea.vmem %s1868_s12, 32  ;;  %p2470_p11 = scmp.lt.s32.totalorder %s1868_s12, %s1868_s12 }
  0x3d   :  { %v163_v24 = vld [vmem:[#allocation5 + $0x8] sm:$0xff]  ;;  %v164_v26 = vld [vmem:[#allocation5 + $0x10] sm:$0xff]  ;;  %v165_v27 = vld [vmem:[#allocation5 + $0x18] sm:$0xff]  ;;  %p2466_p10 = scmp.ne.s32.totalorder %s1868_s12, %s2465_s15  ;;  %p2471_p12 = scmp.lt.s32.totalorder %s2465_s15, %s2465_s15 }
  0x3e   :  { %2260 = vmatpush3.bf16.msra.mxu1 %v2249_v6  ;;  %v2269_v25 = vpack.c.bf16 %v163_v24, %v162_v23  ;;  %v2273_v31 = vpack.c.bf16 %v165_v27, %v164_v26  ;;  %v503_v33 = vld [vmem:[#allocation5 + $0x40] sm:$0xff]  ;;  %v504_v34 = vld [vmem:[#allocation5 + $0x48] sm:$0xff]  ;;  %v505_v36 = vld [vmem:[#allocation5 + $0x50] sm:$0xff] }
  0x3f   :  { %2252 = vmatpush3.bf16.msra.mxu0 %v2249_v6  ;;  %2051 = vmatprep.subr.msk.mxu1 %vm83_vm1, %v73_v8  ;;  %v2285_v35 = vpack.c.bf16 %v504_v34, %v503_v33  ;;  %v506_v37 = vld [vmem:[#allocation5 + $0x58] sm:$0xff]  ;;  %v675_v40 = vld [vmem:[#allocation5 + $0x60] sm:$0xff]  ;;  %v676_v41 = vld [vmem:[#allocation5 + $0x68] sm:$0xff]  ;;  %v978_v34 = vsub.s32 2, %v2640_v58  ;;  %p2472_p13 = por %p2471_p12, %p2470_p11 }
  0x40   :  { %2038 = vmatprep.subr.msk.mxu0 %vm83_vm1, %v73_v8  ;;  %v2289_v38 = vpack.c.bf16 %v506_v37, %v505_v36  ;;  %v2301_v43 = vpack.c.bf16 %v676_v41, %v675_v40  ;;  %v677_v44 = vld [vmem:[#allocation5 + $0x70] sm:$0xff]  ;;  %v678_v45 = vld [vmem:[#allocation5 + $0x78] sm:$0xff]  ;;  %v847_v47 = vld [vmem:[#allocation5 + $0x80] sm:$0xff] }
  0x41   :  { %v2305_v46 = vpack.c.bf16 %v678_v45, %v677_v44  ;;  %v848_v48 = vld [vmem:[#allocation5 + $0x88] sm:$0xff]  ;;  %v849_v52 = vld [vmem:[#allocation5 + $0x90] sm:$0xff]  ;;  %v850_v53 = vld [vmem:[#allocation5 + $0x98] sm:$0xff]  ;;  %p2473_p0 = pnand %p2472_p13, %p2466_p10 }
  0x42   :  { %2052 = vmatpush3.msk.msra.mxu1 %vm83_vm1, %v73_v8  ;;  %v2317_v51 = vpack.c.bf16 %v848_v48, %v847_v47  ;;  %v2321_v54 = vpack.c.bf16 %v850_v53, %v849_v52  ;;  %v2646_v60 = vld [vmem:[%s2772_s6] sm:$0x3f]  ;;  %vm2666_vm6 = vmpackc.low %vm83_vm1, %vm2501_vm5  ;;  %v1140_v45 = vld [vmem:[#allocation7 + $0x20] sm:$0xff] }
  0x43   :  { %2039 = vmatpush3.msk.msra.mxu0 %vm83_vm1, %v73_v8  ;;  %2054 = vmatmul.mubr.msk.f32.vlgmr.msra.gmra.mrb[0].mxu1 %vm76_vm0, %v168_v11  ;;  %v937_v61 = vrot.slane %v2646_v60, %v936_v59  ;;  %v982_v44 = vld [vmem:[%s2769_s3] sm:$0xf]  ;;  %v1904_v47 = vld [vmem:[%s2769_s3 + $0x4] sm:$0xf]  ;;  %v1913_v57 = vld [vmem:[%s2769_s3 + $0xc] sm:$0xf] }
  0x44   :  { %2278 = vmatprep.subr.bf16.mxu1 %v2245_v3  ;;  %2041 = vmatmul.mubr.msk.f32.vlgmr.msra.gmra.mrb[0].mxu0 %vm76_vm0, %v75_v12  ;;  %v1366_v59 = vld [vmem:[#allocation7 + $0x40] sm:$0xff] }
  0x45   :  { %2280 = vmatpush3.bf16.msra.mxu1 %v2245_v3  ;;  %2088 = vmatprep.mubr.msk.f32.mxu1 %vm76_vm0, %v419_v15 }
  0x46   :  { %2282 = vmatprep.subr.bf16.mxu1 %v2249_v6  ;;  %2262 = vmatprep.subr.bf16.mxu0 %v2261_v16 }
  0x47   :  { %2264 = vmatpush3.bf16.msra.mxu0 %v2261_v16  ;;  %v2498_v16 = vmov 0.0|0.0  }
  0x48   :  { %2266 = vmatprep.subr.bf16.mxu0 %v2265_v17 }
  0x49   :  { %2284 = vmatpush3.bf16.msra.mxu1 %v2249_v6 }
  0x4a   :  { %2086 = vmatprep.subr.msk.mxu1 %vm83_vm1, %v73_v8 }
  0x4b   :  { %2268 = vmatpush3.bf16.msra.mxu0 %v2265_v17  ;;  %v2500_v17 = vmov 0.0  }
  0x4c   :  { %2270 = vmatprep.subr.bf16.mxu0 %v2269_v25 }
  0x4d   :  { %2087 = vmatpush3.msk.msra.mxu1 %vm83_vm1, %v73_v8 }
  0x4e   :  { %2294 = vmatprep.subr.bf16.mxu1 %v2245_v3  ;;  %2089 = vmatmul.mubr.msk.f32.vlgmr.msra.gmra.mrb[2].mxu1 %vm76_vm0, %v420_v18  ;;  %v1060_v18 = vld [vmem:[#allocation7] sm:$0xff] }
  0x4f   :  { %2296 = vmatpush3.bf16.msra.mxu1 %v2245_v3  ;;  %2112 = vmatprep.mubr.msk.f32.mxu1 %vm76_vm0, %v591_v19  ;;  %v1061_v19 = vld [vmem:[#allocation7 + $0x8] sm:$0xff] }
  0x50   :  { %2298 = vmatprep.subr.bf16.mxu1 %v2249_v6 }
  0x53   :  { %2300 = vmatpush3.bf16.msra.mxu1 %v2249_v6 }
  0x54   :  { %2110 = vmatprep.subr.msk.mxu1 %vm83_vm1, %v73_v8 }
  0x57   :  { %2111 = vmatpush3.msk.msra.mxu1 %vm83_vm1, %v73_v8 }
  0x58   :  { %2310 = vmatprep.subr.bf16.mxu1 %v2245_v3  ;;  %2113 = vmatmul.mubr.msk.f32.vlgmr.msra.gmra.mrb[4].mxu1 %vm76_vm0, %v592_v20  ;;  %v2340_v20 = vpack.c.bf16 %v1061_v19, %v1060_v18  ;;  %v1917_v19 = vld [vmem:[%s2769_s3 + $0x10] sm:$0xf] }
  0x59   :  { %2312 = vmatpush3.bf16.msra.mxu1 %v2245_v3  ;;  %2136 = vmatprep.mubr.msk.f32.mxu1 %vm76_vm0, %v763_v21  ;;  %v1062_v21 = vld [vmem:[#allocation7 + $0x10] sm:$0xff] }
  0x5a   :  { %2314 = vmatprep.subr.bf16.mxu1 %v2249_v6 }
  0x5d   :  { %2316 = vmatpush3.bf16.msra.mxu1 %v2249_v6 }
  0x5e   :  { %2134 = vmatprep.subr.msk.mxu1 %vm83_vm1, %v73_v8 }
  0x61   :  { %2135 = vmatpush3.msk.msra.mxu1 %vm83_vm1, %v73_v8 }
  0x62   :  { %2137 = vmatmul.mubr.msk.f32.vlgmr.msra.gmra.mrb[6].mxu1 %vm76_vm0, %v764_v22  ;;  %2325 = vmatprep.subr.bf16.mxu1 %v2498_v16  ;;  %v1063_v22 = vld [vmem:[#allocation7 + $0x18] sm:$0xff] }
  0x63   :  { %2154 = vmatprep.mubr.msk.f32.mxu1 %vm2499_vm4, %v2500_v17  ;;  %v2343_v23 = vpack.c.bf16 %v1063_v22, %v1062_v21 }
 0x116   :  { %v2055_v28 = vpop.f32.mrb[0].mxu1 }
 0x117   :  { %v241_v29 = vpop.f32.mrb[1].mxu1  ;;  %v2042_v30 = vpop.f32.mrb[0].mxu0 }
 0x118   :  { %2064 = vmatprep.mubr.msk.f32.mxu0 %vm255_vm2, %v241_v29  ;;  %v153_v32 = vpop.f32.mrb[1].mxu0 }
 0x119   :  { %2065 = vmatmul.mubr.msk.f32.vlgmr.msra.gmra.mrb[2].mxu0 %vm255_vm2, %v2055_v28 }
 0x11a   :  { %2272 = vmatpush3.bf16.msra.mxu0 %v2269_v25  ;;  %2075 = vmatprep.mubr.msk.f32.mxu0 %vm255_vm2, %v153_v32 }
 0x11b   :  { %2274 = vmatprep.subr.bf16.mxu0 %v2273_v31 }
 0x11e   :  { %2276 = vmatpush3.bf16.msra.mxu0 %v2273_v31 }
 0x11f   :  { %2286 = vmatprep.subr.bf16.mxu0 %v2285_v35 }
 0x121   :  { %v2090_v39 = vpop.f32.mrb[2].mxu1  ;;  %2076 = vmatmul.mubr.msk.f32.vlgmr.msra.gmra.mrb[2].mxu0 %vm255_vm2, %v2042_v30  ;;  %v972_v30 = vsub.s32 1, %v2640_v58 }
 0x122   :  { %v493_v42 = vpop.f32.mrb[3].mxu1  ;;  %2288 = vmatpush3.bf16.msra.mxu0 %v2285_v35 }
 0x123   :  { %2099 = vmatprep.mubr.msk.f32.mxu0 %vm255_vm2, %v493_v42  ;;  %2290 = vmatprep.subr.bf16.mxu0 %v2289_v38  ;;  %v973_v32 = vrot.slane %v2646_v60, %v972_v30 }
 0x126   :  { %2292 = vmatpush3.bf16.msra.mxu0 %v2289_v38  ;;  %v979_v38 = vrot.slane %v2646_v60, %v978_v34  ;;  %v1754_v34 = vsub.s32 3, %v2640_v58 }
 0x127   :  { %2302 = vmatprep.subr.bf16.mxu0 %v2301_v43 }
 0x129   :  { %2100 = vmatmul.mubr.msk.f32.vlgmr.msra.gmra.mrb[2].mxu0 %vm255_vm2, %v2090_v39 }
 0x12a   :  { %2304 = vmatpush3.bf16.msra.mxu0 %v2301_v43 }
 0x12b   :  { %v2114_v49 = vpop.f32.mrb[4].mxu1  ;;  %2306 = vmatprep.subr.bf16.mxu0 %v2305_v46 }
 0x12c   :  { %v665_v50 = vpop.f32.mrb[5].mxu1 }
 0x12d   :  { %2123 = vmatprep.mubr.msk.f32.mxu0 %vm255_vm2, %v665_v50  ;;  %v1143_v50 = vld [vmem:[#allocation7 + $0x38] sm:$0xff] }
 0x12e   :  { %2308 = vmatpush3.bf16.msra.mxu0 %v2305_v46  ;;  %v1141_v46 = vld [vmem:[#allocation7 + $0x28] sm:$0xff] }
 0x12f   :  { %2318 = vmatprep.subr.bf16.mxu0 %v2317_v51  ;;  %v2334_v48 = vpack.c.bf16 %v1141_v46, %v1140_v45 }
 0x131   :  { %2124 = vmatmul.mubr.msk.f32.vlgmr.msra.gmra.mrb[2].mxu0 %vm255_vm2, %v2114_v49  ;;  %v1142_v49 = vld [vmem:[#allocation7 + $0x30] sm:$0xff] }
 0x132   :  { %2320 = vmatpush3.bf16.msra.mxu0 %v2317_v51  ;;  %v2337_v51 = vpack.c.bf16 %v1143_v50, %v1142_v49  ;;  %v1778_v49 = vsub.s32 5, %v2640_v58 }
 0x133   :  { %2322 = vmatprep.subr.bf16.mxu0 %v2321_v54 }
 0x135   :  { %v2138_v55 = vpop.f32.mrb[6].mxu1 }
 0x136   :  { %v837_v56 = vpop.f32.mrb[7].mxu1  ;;  %2324 = vmatpush3.bf16.msra.mxu0 %v2321_v54 }
 0x137   :  { %2147 = vmatprep.mubr.msk.f32.mxu0 %vm255_vm2, %v837_v56  ;;  %2339 = vmatprep.subr.bf16.mxu0 %v2498_v16  ;;  %v1909_v56 = vld [vmem:[%s2769_s3 + $0x8] sm:$0xf] }
 0x139   :  { %2148 = vmatmul.mubr.msk.f32.vlgmr.msra.gmra.mrb[2].mxu0 %vm255_vm2, %v2138_v55 }
 0x13a   :  { %2183 = vmatprep.mubr.msk.f32.mxu0 %vm2499_vm4, %v2500_v17  ;;  %2341 = vmatpush3.bf16.msra.mxu0 %v2340_v20 }
 0x13b   :  { %2342 = vmatprep.subr.bf16.mxu0 %v2498_v16 }
 0x13e   :  { %2344 = vmatpush3.bf16.msra.mxu0 %v2343_v23  ;;  %v1676_v23 = vld [vmem:[#allocation7 + $0x90] sm:$0xff] }
 0x13f   :  { %2349 = vmatprep.subr.bf16.mxu0 %v2498_v16 }
 0x20c   :  { %v2149_v62 = vpop.f32.mrb[2].mxu0 }
 0x20d   :  { %v923_v63 = vpop.f32.mrb[3].mxu0  ;;  %v939_v0 = vadd.f32 %v2149_v62, %v937_v61 }
 0x20e   :  { %v938_v1 = vadd.f32 %v937_v61, %v923_v63  ;;  %v1367_v61 = vld [vmem:[#allocation7 + $0x48] sm:$0xff]  ;;  %v1368_v63 = vld [vmem:[#allocation7 + $0x50] sm:$0xff] }
 0x20f   :  { %v941_v3 = vmax.f32 %v939_v0, 0.0  ;;  %v2350_v62 = vpack.c.bf16 %v1367_v61, %v1366_v59  ;;  %v1369_v0 = vld [vmem:[#allocation7 + $0x58] sm:$0xff] }
 0x210   :  { %v940_v2 = vmax.f32 %v938_v1, 0.0  ;;  %v2353_v1 = vpack.c.bf16 %v1369_v0, %v1368_v63 }
 0x211   :  { %v946_v5 = vsel %vm945_vm3, %v941_v3, 0.0 }
 0x212   :  { %v942_v4 = vsel %vm255_vm2, %v940_v2, 0.0 }
 0x213   :  { %943 = vadd.xlane.f32.xlu0 %v942_v4 }
 0x217   :  { %947 = vadd.xlane.f32.xlu0 %v946_v5  ;;  %v1522_v5 = vld [vmem:[#allocation7 + $0x70] sm:$0xff] }
 0x2a0   :  { %v944_v6 = vpop.xlane.xlu0 %943 }
 0x2a1   :  { %v950_v7 = vmul.f32 0.03125, %v944_v6  ;;  %v1523_v6 = vld [vmem:[#allocation7 + $0x78] sm:$0xff] }
 0x2a3   :  { %v952_v8 = vsub.f32 %v940_v2, %v950_v7  ;;  %v1520_v2 = vld [vmem:[#allocation7 + $0x60] sm:$0xff]  ;;  %v2363_v7 = vpack.c.bf16 %v1523_v6, %v1522_v5 }
 0x2a4   :  { %v948_v9 = vpop.xlane.xlu0 %947 }
 0x2a5   :  { %v951_v10 = vmul.f32 0.03125, %v948_v9  ;;  %v954_v11 = vmul.f32 %v952_v8, %v952_v8 }
 0x2a7   :  { %v953_v12 = vsub.f32 %v941_v3, %v951_v10  ;;  %v956_v13 = vsel %vm255_vm2, %v954_v11, 0.0  ;;  %v1521_v3 = vld [vmem:[#allocation7 + $0x68] sm:$0xff] }
 0x2a8   :  { %957 = vadd.xlane.f32.xlu1 %v956_v13  ;;  %v2360_v4 = vpack.c.bf16 %v1521_v3, %v1520_v2  ;;  %v1674_v13 = vld [vmem:[#allocation7 + $0x80] sm:$0xff] }
 0x2a9   :  { %v955_v14 = vmul.f32 %v953_v12, %v953_v12 }
 0x2ab   :  { %v959_v15 = vsel %vm945_vm3, %v955_v14, 0.0  ;;  %v1675_v14 = vld [vmem:[#allocation7 + $0x88] sm:$0xff] }
 0x2ac   :  { %960 = vadd.xlane.f32.xlu1 %v959_v15  ;;  %v2370_v20 = vpack.c.bf16 %v1675_v14, %v1674_v13 }
 0x335   :  { %v958_v24 = vpop.xlane.xlu1 %957 }
 0x336   :  { %v962_v25 = vmul.f32 0.03125, %v958_v24  ;;  %v1677_v24 = vld [vmem:[#allocation7 + $0x98] sm:$0xff] }
 0x338   :  { %v964_v26 = vadd.f32 1e-05, %v962_v25  ;;  %v2373_v25 = vpack.c.bf16 %v1677_v24, %v1676_v23 }
 0x339   :  { %v961_v27 = vpop.xlane.xlu1 %960 }
 0x33a   :  { %2393 = vrsqrt.f32 %v964_v26  ;;  %v963_v28 = vmul.f32 0.03125, %v961_v27 }
 0x33c   :  { %v965_v29 = vadd.f32 1e-05, %v963_v28 }
 0x33e   :  { %2395 = vrsqrt.f32 %v965_v29 }
 0x344   :  { %v2394_v31 = vpop.eup %2393 }
 0x345   :  { %v968_v33 = vmul.f32 %v2394_v31, %v952_v8 }
 0x347   :  { %v974_v36 = vmul.f32 %v973_v32, %v968_v33 }
 0x348   :  { %v2396_v35 = vpop.eup %2395 }
 0x349   :  { %v969_v37 = vmul.f32 %v2396_v35, %v953_v12  ;;  %v980_v40 = vadd.f32 %v979_v38, %v974_v36 }
 0x34b   :  { %v975_v39 = vmul.f32 %v973_v32, %v969_v37 }
 0x34d   :  { %v981_v41 = vadd.f32 %v979_v38, %v975_v39 }
 0x34f   :  { %v2670_v43 = vpack.c.bf16 %v981_v41, %v980_v40 }
 0x351   :  { %2328 = vmatpush3.bf16.msk.msra.mxu1 %vm2666_vm6, %v2670_v43 }
 0x352   :  { %2329 = vmatprep.subr.bf16.mxu1 %v2498_v16 }
 0x354   :  { %2155 = vmatmul.mubr.msk.f32.vlgmr.msra.gmra.mrb[8].mxu1 %vm983_vm7, %v982_v44 }
 0x355   :  { %2332 = vmatpush3.bf16.msk.msra.mxu1 %vm2666_vm6, %v2670_v43  ;;  %2161 = vmatprep.mubr.msk.f32.mxu1 %vm2499_vm4, %v2500_v17 }
 0x356   :  { %2333 = vmatprep.subr.bf16.mxu1 %v2498_v16 }
 0x358   :  { %2162 = vmatmul.mubr.msk.f32.vlgmr.msra.gmra.mrb[10].mxu1 %vm983_vm7, %v1904_v47 }
 0x359   :  { %2335 = vmatpush3.bf16.msra.mxu1 %v2334_v48  ;;  %2172 = vmatprep.mubr.msk.f32.mxu1 %vm2499_vm4, %v2500_v17  ;;  %v1773_v48 = vsub.s32 4, %v2640_v58 }
 0x35a   :  { %2336 = vmatprep.subr.bf16.mxu1 %v2498_v16 }
 0x35b   :  { %v1774_v50 = vrot.slane %v2646_v60, %v1773_v48 }
 0x35d   :  { %2338 = vmatpush3.bf16.msra.mxu1 %v2337_v51 }
 0x35e   :  { %2345 = vmatprep.subr.bf16.mxu1 %v2498_v16 }
 0x427   :  { %v1056_v52 = vpop.f32.mrb[8].mxu1 }
 0x428   :  { %v2156_v53 = vpop.f32.mrb[9].mxu1  ;;  %2184 = vmatmul.mubr.msk.f32.vlgmr.msra.gmra.mrb[4].mxu0 %vm255_vm2, %v1056_v52 }
 0x429   :  { %2201 = vmatprep.mubr.msk.f32.mxu0 %vm2499_vm4, %v2500_v17  ;;  %2351 = vmatpush3.bf16.msra.mxu0 %v2350_v62  ;;  %v1779_v53 = vrot.slane %v2646_v60, %v1778_v49 }
 0x42a   :  { %2352 = vmatprep.subr.bf16.mxu0 %v2498_v16 }
 0x42b   :  { %v1135_v54 = vpop.f32.mrb[10].mxu1 }
 0x42c   :  { %v2163_v55 = vpop.f32.mrb[11].mxu1  ;;  %2173 = vmatmul.mubr.msk.f32.vlgmr.msra.gmra.mrb[12].mxu1 %vm255_vm2, %v1135_v54 }
 0x42d   :  { %2348 = vmatpush3.bf16.msk.msra.mxu1 %vm2666_vm6, %v2670_v43  ;;  %2190 = vmatprep.mubr.msk.f32.mxu1 %vm2499_vm4, %v2500_v17 }
 0x42e   :  { %2355 = vmatprep.subr.bf16.mxu1 %v2498_v16  ;;  %2354 = vmatpush3.bf16.msra.mxu0 %v2353_v1 }
 0x42f   :  { %2365 = vmatprep.subr.bf16.mxu0 %v2498_v16 }
 0x430   :  { %2191 = vmatmul.mubr.msk.f32.vlgmr.msra.gmra.mrb[14].mxu1 %vm983_vm7, %v1909_v56  ;;  %v1781_v56 = vld [vmem:[%s2771_s5] sm:$0x3] }
 0x431   :  { %2358 = vmatpush3.bf16.msk.msra.mxu1 %vm2666_vm6, %v2670_v43  ;;  %2208 = vmatprep.mubr.msk.f32.mxu1 %vm2499_vm4, %v2500_v17 }
 0x432   :  { %2359 = vmatprep.subr.bf16.mxu1 %v2498_v16 }
 0x434   :  { %2209 = vmatmul.mubr.msk.f32.vlgmr.msra.gmra.mrb[16].mxu1 %vm983_vm7, %v1913_v57 }
 0x435   :  { %2219 = vmatprep.mubr.msk.f32.mxu1 %vm2499_vm4, %v2500_v17  ;;  %2361 = vmatpush3.bf16.msra.mxu1 %v2360_v4 }
 0x436   :  { %2362 = vmatprep.subr.bf16.mxu1 %v2498_v16 }
 0x439   :  { %2364 = vmatpush3.bf16.msra.mxu1 %v2363_v7 }
 0x43a   :  { %2240 = vmatprep.subr.mxu1 %v2500_v17 }
 0x4fb   :  { %v1286_v8 = vpop.f32.mrb[4].mxu0 }
 0x4fc   :  { %v2185_v9 = vpop.f32.mrb[5].mxu0 }
 0x4ff   :  { %v1213_v10 = vpop.f32.mrb[12].mxu1 }
 0x500   :  { %v1287_v11 = vadd.f32 %v1286_v8, %v1213_v10  ;;  %v2174_v12 = vpop.f32.mrb[13].mxu1 }
 0x503   :  { %v1361_v15 = vpop.f32.mrb[14].mxu1 }
 0x504   :  { %v2192_v18 = vpop.f32.mrb[15].mxu1  ;;  %2202 = vmatmul.mubr.msk.f32.vlgmr.msra.gmra.mrb[6].mxu0 %vm255_vm2, %v1361_v15 }
 0x505   :  { %2368 = vmatpush3.bf16.msk.msra.mxu0 %vm2666_vm6, %v2670_v43  ;;  %2226 = vmatprep.mubr.msk.f32.mxu0 %vm2499_vm4, %v2500_v17 }
 0x506   :  { %2369 = vmatprep.subr.bf16.mxu0 %v2498_v16 }
 0x507   :  { %v1515_v21 = vpop.f32.mrb[16].mxu1 }
 0x508   :  { %2220 = vmatmul.mubr.msk.f32.vlgmr.msra.gmra.mrb[18].mxu1 %vm255_vm2, %v1515_v21  ;;  %2227 = vmatmul.mubr.msk.f32.vlgmr.msra.gmra.mrb[8].mxu0 %vm983_vm7, %v1917_v19  ;;  %v2210_v22 = vpop.f32.mrb[17].mxu1 }
 0x509   :  { %2371 = vmatpush3.bf16.msra.mxu0 %v2370_v20  ;;  %2237 = vmatprep.mubr.msk.f32.mxu0 %vm2499_vm4, %v2500_v17 }
 0x50a   :  { %2372 = vmatprep.subr.bf16.mxu0 %v2498_v16  ;;  %2242 = vmatprep.mubr.msk.f32.mxu1 %vm2499_vm4, %v2500_v17  ;;  %v1755_v16 = vrot.slane %v2646_v60, %v1754_v34 }
 0x50d   :  { %2374 = vmatpush3.bf16.msra.mxu0 %v2373_v25 }
 0x5d7   :  { %v1439_v26 = vpop.f32.mrb[6].mxu0 }
 0x5d8   :  { %v1443_v27 = vadd.f32 %v1439_v26, %v1287_v11  ;;  %v2203_v28 = vpop.f32.mrb[7].mxu0 }
 0x5db   :  { %v1593_v29 = vpop.f32.mrb[18].mxu1  ;;  %v1669_v30 = vpop.f32.mrb[8].mxu0 }
 0x5dc   :  { %v1597_v31 = vadd.f32 %v1593_v29, %v1443_v27  ;;  %v2228_v32 = vpop.f32.mrb[9].mxu0  ;;  %2238 = vmatmul.mubr.msk.f32.vlgmr.msra.gmra.mrb[10].mxu0 %vm255_vm2, %v1669_v30  ;;  %v2221_v33 = vpop.f32.mrb[19].mxu1 }
 0x6af   :  { %v1747_v35 = vpop.f32.mrb[10].mxu0 }
 0x6b0   :  { %v1751_v17 = vadd.f32 %v1747_v35, %v1597_v31  ;;  %v2239_v36 = vpop.f32.mrb[11].mxu0 }
 0x6b2   :  { %v1756_v37 = vadd.f32 %v1755_v16, %v1751_v17 }
 0x6b4   :  { %v1757_v38 = vmax.f32 %v1756_v37, 0.0 }
 0x6b6   :  { %v1758_v39 = vsel %vm945_vm3, %v1757_v38, 0.0 }
 0x6b7   :  { %1759 = vadd.xlane.f32.xlu0 %v1758_v39 }
 0x744   :  { %v1760_v40 = vpop.xlane.xlu0 %1759 }
 0x745   :  { %v1761_v41 = vmul.f32 0.03125, %v1760_v40 }
 0x747   :  { %v1762_v42 = vsub.f32 %v1757_v38, %v1761_v41 }
 0x749   :  { %v1763_v43 = vmul.f32 %v1762_v42, %v1762_v42 }
 0x74b   :  { %v1764_v44 = vsel %vm945_vm3, %v1763_v43, 0.0 }
 0x74c   :  { %1765 = vadd.xlane.f32.xlu1 %v1764_v44 }
 0x7d9   :  { %v1766_v45 = vpop.xlane.xlu1 %1765 }
 0x7da   :  { %v1767_v46 = vmul.f32 0.03125, %v1766_v45 }
 0x7dc   :  { %v1768_v47 = vadd.f32 1e-05, %v1767_v46 }
 0x7de   :  { %2397 = vrsqrt.f32 %v1768_v47 }
 0x7e8   :  { %v2398_v51 = vpop.eup %2397 }
 0x7e9   :  { %v1770_v52 = vmul.f32 %v2398_v51, %v1762_v42 }
 0x7eb   :  { %v1775_v54 = vmul.f32 %v1774_v50, %v1770_v52 }
 0x7ed   :  { %v1780_v55 = vadd.f32 %v1779_v53, %v1775_v54 }
 0x7ef   :  { %2241 = vmatpush3.msk.msra.mxu1 %vm83_vm1, %v1780_v55 }
 0x7f0   :  { %2243 = vmatmul.mubr.msk.f32.vlgmr.msra.gmra.mrb[20].mxu1 %vm1782_vm8, %v1781_v56 }
 0x8c3   :  { %v1855_v58 = vpop.f32.mrb[20].mxu1 }
 0x8c4   :  { %v2244_v57 = vpop.f32.mrb[21].mxu1  ;;  %1860 = vst.msk [vmem:[#allocation8] sm:$0x3] %vm1859_vm9, %v1855_v58 }
 0x8c5   :  { %2476 = shalt.err (!%p2473_p0)
}
 0x8c6   :  { %s2477_s27 = scalar_lea.hbm %s2773_s7, 32 }
 0x8c7   :  { %p2478_p1 = scmp.ne.s32.totalorder %s2773_s7, %s2477_s27  ;;  %p2481_p2 = scmp.lt.u32.totalorder %s2477_s27, %s2773_s7 }
 0x8c9   :  { %p2483_p3 = pnand %p2481_p2, %p2478_p1 }
 0x8cb   :  { %2486 = shalt.err (!%p2483_p3)
}
 0x8cc   :  { %1870 = dma.vmem_to_hbm [thread:$0]  %s1868_s12, 32, %s2773_s7, [#allocation4]  }
 0x8cd   :  { %2491 = dma.done.wait [#allocation4], 32  }
 0x8ce   :  { %2492 = vsyncadd [#allocation4], 4294967264 }
 0x8cf   :  { %1874 = vsyncpa [#allocation3], 1 }
 0x8d0   :  { %1875 = vsyncpa [#allocation6], 1 }
 0x8d1   :  { %1876 = vsyncpa [#allocation4], 1 }

</bundles_post_ra>
